<compile_context>
chip_gen: v6e
topology: v6e:2x2x1
jax: 0.10.0
libtpu: 0.0.40
codegen_flags: <defaults>
</compile_context>

<pallas_src>
import jax
import jax.numpy as jnp
from jax import lax
from jax.experimental import pallas as pl
from jax.experimental.pallas import tpu as pltpu


def _round_up(x, m):
    return ((x + m - 1) // m) * m


def _cdiv(a, b):
    return -(-a // b)


_INV_SQRT2 = 0.7071067811865475


def _bias_gelu_f32(acc, b):
    acc = acc + b
    # exact (erf-based) GELU in f32 — matches torch.nn.GELU default
    return 0.5 * acc * (1.0 + lax.erf(acc * _INV_SQRT2))


# --------------------------- Pallas kernels ---------------------------------

def _gemm_bias_gelu_1step_kernel(x_ref, w_ref, b_ref, o_ref):
    # Whole K reduction in one tile: no scratch, no pl.when, write-once output.
    acc = jnp.dot(x_ref[...], w_ref[...], preferred_element_type=jnp.float32)
    o_ref[...] = _bias_gelu_f32(acc, b_ref[...]).astype(o_ref.dtype)


def _gemm_bias_gelu_multistep_kernel(x_ref, w_ref, b_ref, o_ref, acc_ref):
    k = pl.program_id(1)

    @pl.when(k == 0)
    def _init():
        acc_ref[...] = jnp.zeros_like(acc_ref)

    acc_ref[...] += jnp.dot(
        x_ref[...], w_ref[...], preferred_element_type=jnp.float32
    )

    @pl.when(k == pl.num_programs(1) - 1)
    def _finalize():
        o_ref[...] = _bias_gelu_f32(acc_ref[...], b_ref[...]).astype(o_ref.dtype)


def _fused_gemm_bias_gelu(patches, w2d, bias, *, out_dtype,
                          tm_max=1024, tk_max=1024):
    """patches (M, K) bf16, w2d (K, Cout) bf16, bias (Cout,) -> (M, Cout)."""
    M, K = patches.shape
    _, Cout = w2d.shape
    b2d = bias.reshape(1, Cout).astype(jnp.float32)
    out_isz = jnp.dtype(out_dtype).itemsize

    # ---- M tiling: >=2 tiles once there is real work (v7x megacore). --------
    n_m = max(1, _cdiv(M, tm_max))
    if M > 256:
        n_m = max(n_m, 2)
    if n_m == 1:
        tm, m_p = M, M                       # full-dim block, no padding needed
    else:
        tm = _round_up(_cdiv(M, n_m), 16)    # bf16 sublane packing
        m_p = tm * n_m

    # ---- K tiling: unpadded single step when it fits; else minimal padding. -
    if K <= tk_max:
        tk, k_p, n_k = K, K, 1
    else:
        k128 = _round_up(K, 128)
        n_k = _cdiv(k128, tk_max)
        tk = _round_up(_cdiv(k128, n_k), 128)
        k_p = tk * n_k

    if (m_p, k_p) != (M, K):
        patches = jnp.pad(patches, ((0, m_p - M), (0, k_p - K)))
    if k_p != K:
        w2d = jnp.pad(w2d, ((0, k_p - K), (0, 0)))

    cost = pl.CostEstimate(
        flops=2 * M * K * Cout,
        transcendentals=M * Cout,
        bytes_accessed=M * K * 2 + K * Cout * 2 + Cout * 4 + M * Cout * out_isz,
    )

    # Only raise the scoped-VMEM limit when double-buffered tiles need it.
    est_vmem = (2 * (tm * tk * 2 + tk * Cout * 2 + Cout * 4 + tm * Cout * out_isz)
                + (tm * Cout * 4 if n_k > 1 else 0))
    compiler_kwargs = {}
    if est_vmem > 24 * 1024 * 1024:
        compiler_kwargs["vmem_limit_bytes"] = int(min(2 * est_vmem,
                                                      60 * 1024 * 1024))

    if n_k == 1:
        out = pl.pallas_call(
            _gemm_bias_gelu_1step_kernel,
            out_shape=jax.ShapeDtypeStruct((m_p, Cout), out_dtype),
            grid_spec=pltpu.PrefetchScalarGridSpec(
                num_scalar_prefetch=0,
                grid=(n_m,),
                in_specs=[
                    pl.BlockSpec((tm, tk), lambda i: (i, 0)),
                    pl.BlockSpec((tk, Cout), lambda i: (0, 0)),
                    pl.BlockSpec((1, Cout), lambda i: (0, 0)),
                ],
                out_specs=pl.BlockSpec((tm, Cout), lambda i: (i, 0)),
            ),
            compiler_params=pltpu.CompilerParams(
                dimension_semantics=("parallel",), **compiler_kwargs),
            cost_estimate=cost,
        )(patches, w2d, b2d)
    else:
        out = pl.pallas_call(
            _gemm_bias_gelu_multistep_kernel,
            out_shape=jax.ShapeDtypeStruct((m_p, Cout), out_dtype),
            grid_spec=pltpu.PrefetchScalarGridSpec(
                num_scalar_prefetch=0,
                grid=(n_m, n_k),
                in_specs=[
                    pl.BlockSpec((tm, tk), lambda i, kk: (i, kk)),
                    pl.BlockSpec((tk, Cout), lambda i, kk: (kk, 0)),
                    pl.BlockSpec((1, Cout), lambda i, kk: (0, 0)),
                ],
                out_specs=pl.BlockSpec((tm, Cout), lambda i, kk: (i, 0)),
                scratch_shapes=[pltpu.VMEM((tm, Cout), jnp.float32)],
            ),
            compiler_params=pltpu.CompilerParams(
                dimension_semantics=("parallel", "arbitrary"), **compiler_kwargs),
            cost_estimate=cost,
        )(patches, w2d, b2d)

    return out[:M] if m_p != M else out


# --------------------------- JAX glue ---------------------------------------

def _im2col(x_nhwc, k, stride):
    """Extract k x k patches with the given stride. Column order = (kh, kw, ci)."""
    N, Hp, Wp, C = x_nhwc.shape
    OH = (Hp - k) // stride + 1
    OW = (Wp - k) // stride + 1
    cols = []
    for kh in range(k):
        for kw in range(k):
            cols.append(
                x_nhwc[:, kh:kh + stride * OH:stride, kw:kw + stride * OW:stride, :]
            )
    patches = jnp.stack(cols, axis=3)  # (N, OH, OW, k*k, C)
    return patches.reshape(N * OH * OW, k * k * C), (N, OH, OW)


def conv_gelu(x_nhwc, w_oihw, bias, *, stride, pad, pad_mode, out_dtype):
    """Conv2d(kernel=7, stride=2) + bias + exact GELU with explicit padding."""
    cout, cin, k, _ = w_oihw.shape
    x_nhwc = x_nhwc.astype(jnp.bfloat16)        # cast BEFORE pad / im2col
    if pad > 0:
        x_nhwc = jnp.pad(
            x_nhwc, ((0, 0), (pad, pad), (pad, pad), (0, 0)), mode=pad_mode
        )
    patches, (N, OH, OW) = _im2col(x_nhwc, k, stride)
    # (Cout, Cin, kh, kw) -> (kh, kw, Cin, Cout) -> (k*k*Cin, Cout), matching im2col
    w2d = jnp.transpose(w_oihw, (2, 3, 1, 0)).reshape(k * k * cin, cout)
    w2d = w2d.astype(jnp.bfloat16)
    out = _fused_gemm_bias_gelu(patches, w2d, bias, out_dtype=out_dtype)
    return out.reshape(N, OH, OW, cout)


def stupid_en_forward(x_nchw, params):
    x = jnp.transpose(x_nchw, (0, 2, 3, 1))  # NCHW -> NHWC
    # ReflectionPad2d(3) + Conv(in_nc -> mid_nc, k7, s2, p0) + GELU
    x = conv_gelu(x, params["w0"], params["b0"], stride=2, pad=3,
                  pad_mode="reflect", out_dtype=jnp.bfloat16)
    # Conv(mid_nc -> 2*mid_nc, k7, s2, p3) + GELU   (zero padding)
    x = conv_gelu(x, params["w1"], params["b1"], stride=2, pad=3,
                  pad_mode="constant", out_dtype=jnp.bfloat16)
    # Conv(2*mid_nc -> 4*mid_nc, k7, s2, p3) + GELU (zero padding, f32 output)
    x = conv_gelu(x, params["w2"], params["b2"], stride=2, pad=3,
                  pad_mode="constant", out_dtype=jnp.float32)
    return jnp.transpose(x, (0, 3, 1, 2))  # NHWC -> NCHW


# --------------------------- params & reference -----------------------------

def init_params(key, in_nc, mid_nc):
    def conv_init(k, cout, cin, ksz):
        k1, k2 = jax.random.split(k)
        fan_in = cin * ksz * ksz
        bound = 1.0 / float(fan_in) ** 0.5
        w = jax.random.uniform(k1, (cout, cin, ksz, ksz), jnp.float32, -bound, bound)
        b = jax.random.uniform(k2, (cout,), jnp.float32, -bound, bound)
        return w, b

    ks = jax.random.split(key, 3)
    w0, b0 = conv_init(ks[0], mid_nc, in_nc, 7)
    w1, b1 = conv_init(ks[1], 2 * mid_nc, mid_nc, 7)
    w2, b2 = conv_init(ks[2], 4 * mid_nc, 2 * mid_nc, 7)
    return dict(w0=w0, b0=b0, w1=w1, b1=b1, w2=w2, b2=b2)


def _ref_forward(x_nchw, params):
    """Pure-JAX f32 reference (XLA conv) for correctness check."""
    def conv(x, w, b, reflect):
        if reflect:
            x = jnp.pad(x, ((0, 0), (0, 0), (3, 3), (3, 3)), mode="reflect")
            padding = "VALID"
        else:
            padding = [(3, 3), (3, 3)]
        y = lax.conv_general_dilated(
            x, w, (2, 2), padding, dimension_numbers=("NCHW", "OIHW", "NCHW")
        )
        y = y + b[None, :, None, None]
        return jax.nn.gelu(y, approximate=False)

    x = conv(x_nchw, params["w0"], params["b0"], reflect=True)
    x = conv(x, params["w1"], params["b1"], reflect=False)
    x = conv(x, params["w2"], params["b2"], reflect=False)
    return x


# --------------------------- main --------------------------------------------

if __name__ == "__main__":
    key = jax.random.PRNGKey(0)
    kx, kp = jax.random.split(key)

    in_nc, mid_nc = 4, 8
    x = jax.random.normal(kx, (2, in_nc, 16, 16), jnp.float32)  # NCHW, like PyTorch
    params = init_params(kp, in_nc, mid_nc)

    fwd = jax.jit(stupid_en_forward)
    out = fwd(x, params)
    out = jax.block_until_ready(out)

    # Shape: 16 -> 8 -> 4 -> 2 spatial, channels 4*mid_nc
    assert out.shape == (2, 4 * mid_nc, 2, 2), out.shape

    # bf16 MXU operands / bf16 intermediates (f32 accumulate) -> loosened
    # tolerance vs the f32 reference.
    ref = _ref_forward(x, params)
    assert jnp.allclose(out, ref, atol=5e-2, rtol=5e-2), (
        float(jnp.max(jnp.abs(out - ref)))
    )

    print("KERNEL_OK")
</pallas_src>

<mosaic_0001>
module attributes {stable_mosaic.version = 11 : i64} {
  func.func @_gemm_bias_gelu_1step_kernel(%arg0: i32, %arg1: memref<128x196xbf16, #tpu.memory_space<vmem>>, %arg2: memref<196x8xbf16, #tpu.memory_space<vmem>>, %arg3: memref<1x8xf32, #tpu.memory_space<vmem>>, %arg4: memref<128x8xbf16, #tpu.memory_space<vmem>>) attributes {dimension_semantics = [#tpu.dimension_semantics<parallel>], iteration_bounds = array<i64: 1>, scalar_prefetch = 0 : i64, scratch_operands = 0 : i64, tpu.core_type = #tpu.core_type<tc>, window_params = [{transform_indices = @transform_0, window_bounds = array<i64: 128, 196>}, {pipeline_mode = #tpu.pipeline_mode<synchronous>, transform_indices = @transform_1, window_bounds = array<i64: 196, 8>}, {pipeline_mode = #tpu.pipeline_mode<synchronous>, transform_indices = @transform_2, window_bounds = array<i64: 1, 8>}, {transform_indices = @transform_3, window_bounds = array<i64: 128, 8>}]} {
    %c0 = arith.constant 0 : index
    %c0_0 = arith.constant 0 : index
    %0 = vector.load %arg1[%c0, %c0_0] : memref<128x196xbf16, #tpu.memory_space<vmem>>, vector<128x196xbf16>
    %c0_1 = arith.constant 0 : index
    %c0_2 = arith.constant 0 : index
    %1 = vector.load %arg2[%c0_1, %c0_2] : memref<196x8xbf16, #tpu.memory_space<vmem>>, vector<196x8xbf16>
    %cst = arith.constant dense<0.000000e+00> : vector<128x8xf32>
    %2 = tpu.matmul %0, %1, %cst {dimension_numbers = #tpu.dot_dimension_numbers<[1], [0], [0], [1], [0, 0, 1, 1], [], []>} : vector<128x196xbf16>, vector<196x8xbf16>, vector<128x8xf32> -> vector<128x8xf32>
    %c0_3 = arith.constant 0 : index
    %c0_4 = arith.constant 0 : index
    %3 = vector.load %arg3[%c0_3, %c0_4] : memref<1x8xf32, #tpu.memory_space<vmem>>, vector<1x8xf32>
    %4 = vector.broadcast %3 : vector<1x8xf32> to vector<128x8xf32>
    %5 = arith.addf %2, %4 : vector<128x8xf32>
    %cst_5 = arith.constant 5.000000e-01 : f32
    %6 = vector.broadcast %cst_5 : f32 to vector<128x8xf32>
    %7 = arith.mulf %6, %5 : vector<128x8xf32>
    %cst_6 = arith.constant 0.707106769 : f32
    %8 = vector.broadcast %cst_6 : f32 to vector<128x8xf32>
    %9 = arith.mulf %5, %8 : vector<128x8xf32>
    %10 = math.erf %9 : vector<128x8xf32>
    %cst_7 = arith.constant 1.000000e+00 : f32
    %11 = vector.broadcast %cst_7 : f32 to vector<128x8xf32>
    %12 = arith.addf %11, %10 : vector<128x8xf32>
    %13 = arith.mulf %7, %12 : vector<128x8xf32>
    %14 = arith.truncf %13 : vector<128x8xf32> to vector<128x8xbf16>
    %c0_8 = arith.constant 0 : index
    %c0_9 = arith.constant 0 : index
    %15 = vector.load %arg4[%c0_8, %c0_9] : memref<128x8xbf16, #tpu.memory_space<vmem>>, vector<128x8xbf16>
    tpu.vector_store %arg4[%c0_8, %c0_9], %14 {strides = array<i32>} : memref<128x8xbf16, #tpu.memory_space<vmem>>, vector<128x8xbf16>,
    return
  }
  func.func @transform_0(%arg0: i32) -> (i32, i32) {
    %c0_i32 = arith.constant 0 : i32
    %c0_i32_0 = arith.constant 0 : i32
    return %arg0, %c0_i32 : i32, i32
  }
  func.func @transform_1(%arg0: i32) -> (i32, i32) {
    %c0_i32 = arith.constant 0 : i32
    %c0_i32_0 = arith.constant 0 : i32
    %c0_i32_1 = arith.constant 0 : i32
    return %c0_i32, %c0_i32_0 : i32, i32
  }
  func.func @transform_2(%arg0: i32) -> (i32, i32) {
    %c0_i32 = arith.constant 0 : i32
    %c0_i32_0 = arith.constant 0 : i32
    %c0_i32_1 = arith.constant 0 : i32
    return %c0_i32, %c0_i32_0 : i32, i32
  }
  func.func @transform_3(%arg0: i32) -> (i32, i32) {
    %c0_i32 = arith.constant 0 : i32
    %c0_i32_0 = arith.constant 0 : i32
    return %arg0, %c0_i32 : i32, i32
  }
}

module attributes {stable_mosaic.version = 11 : i64} {
  func.func @_gemm_bias_gelu_1step_kernel(%arg0: i32, %arg1: memref<32x392xbf16, #tpu.memory_space<vmem>>, %arg2: memref<392x16xbf16, #tpu.memory_space<vmem>>, %arg3: memref<1x16xf32, #tpu.memory_space<vmem>>, %arg4: memref<32x16xbf16, #tpu.memory_space<vmem>>) attributes {dimension_semantics = [#tpu.dimension_semantics<parallel>], iteration_bounds = array<i64: 1>, scalar_prefetch = 0 : i64, scratch_operands = 0 : i64, tpu.core_type = #tpu.core_type<tc>, window_params = [{transform_indices = @transform_0, window_bounds = array<i64: 32, 392>}, {pipeline_mode = #tpu.pipeline_mode<synchronous>, transform_indices = @transform_1, window_bounds = array<i64: 392, 16>}, {pipeline_mode = #tpu.pipeline_mode<synchronous>, transform_indices = @transform_2, window_bounds = array<i64: 1, 16>}, {transform_indices = @transform_3, window_bounds = array<i64: 32, 16>}]} {
    %c0 = arith.constant 0 : index
    %c0_0 = arith.constant 0 : index
    %0 = vector.load %arg1[%c0, %c0_0] : memref<32x392xbf16, #tpu.memory_space<vmem>>, vector<32x392xbf16>
    %c0_1 = arith.constant 0 : index
    %c0_2 = arith.constant 0 : index
    %1 = vector.load %arg2[%c0_1, %c0_2] : memref<392x16xbf16, #tpu.memory_space<vmem>>, vector<392x16xbf16>
    %cst = arith.constant dense<0.000000e+00> : vector<32x16xf32>
    %2 = tpu.matmul %0, %1, %cst {dimension_numbers = #tpu.dot_dimension_numbers<[1], [0], [0], [1], [0, 0, 1, 1], [], []>} : vector<32x392xbf16>, vector<392x16xbf16>, vector<32x16xf32> -> vector<32x16xf32>
    %c0_3 = arith.constant 0 : index
    %c0_4 = arith.constant 0 : index
    %3 = vector.load %arg3[%c0_3, %c0_4] : memref<1x16xf32, #tpu.memory_space<vmem>>, vector<1x16xf32>
    %4 = vector.broadcast %3 : vector<1x16xf32> to vector<32x16xf32>
    %5 = arith.addf %2, %4 : vector<32x16xf32>
    %cst_5 = arith.constant 5.000000e-01 : f32
    %6 = vector.broadcast %cst_5 : f32 to vector<32x16xf32>
    %7 = arith.mulf %6, %5 : vector<32x16xf32>
    %cst_6 = arith.constant 0.707106769 : f32
    %8 = vector.broadcast %cst_6 : f32 to vector<32x16xf32>
    %9 = arith.mulf %5, %8 : vector<32x16xf32>
    %10 = math.erf %9 : vector<32x16xf32>
    %cst_7 = arith.constant 1.000000e+00 : f32
    %11 = vector.broadcast %cst_7 : f32 to vector<32x16xf32>
    %12 = arith.addf %11, %10 : vector<32x16xf32>
    %13 = arith.mulf %7, %12 : vector<32x16xf32>
    %14 = arith.truncf %13 : vector<32x16xf32> to vector<32x16xbf16>
    %c0_8 = arith.constant 0 : index
    %c0_9 = arith.constant 0 : index
    %15 = vector.load %arg4[%c0_8, %c0_9] : memref<32x16xbf16, #tpu.memory_space<vmem>>, vector<32x16xbf16>
    tpu.vector_store %arg4[%c0_8, %c0_9], %14 {strides = array<i32>} : memref<32x16xbf16, #tpu.memory_space<vmem>>, vector<32x16xbf16>,
    return
  }
  func.func @transform_0(%arg0: i32) -> (i32, i32) {
    %c0_i32 = arith.constant 0 : i32
    %c0_i32_0 = arith.constant 0 : i32
    return %arg0, %c0_i32 : i32, i32
  }
  func.func @transform_1(%arg0: i32) -> (i32, i32) {
    %c0_i32 = arith.constant 0 : i32
    %c0_i32_0 = arith.constant 0 : i32
    %c0_i32_1 = arith.constant 0 : i32
    return %c0_i32, %c0_i32_0 : i32, i32
  }
  func.func @transform_2(%arg0: i32) -> (i32, i32) {
    %c0_i32 = arith.constant 0 : i32
    %c0_i32_0 = arith.constant 0 : i32
    %c0_i32_1 = arith.constant 0 : i32
    return %c0_i32, %c0_i32_0 : i32, i32
  }
  func.func @transform_3(%arg0: i32) -> (i32, i32) {
    %c0_i32 = arith.constant 0 : i32
    %c0_i32_0 = arith.constant 0 : i32
    return %arg0, %c0_i32 : i32, i32
  }
}

module attributes {stable_mosaic.version = 11 : i64} {
  func.func @_gemm_bias_gelu_1step_kernel(%arg0: i32, %arg1: memref<8x784xbf16, #tpu.memory_space<vmem>>, %arg2: memref<784x32xbf16, #tpu.memory_space<vmem>>, %arg3: memref<1x32xf32, #tpu.memory_space<vmem>>, %arg4: memref<8x32xf32, #tpu.memory_space<vmem>>) attributes {dimension_semantics = [#tpu.dimension_semantics<parallel>], iteration_bounds = array<i64: 1>, scalar_prefetch = 0 : i64, scratch_operands = 0 : i64, tpu.core_type = #tpu.core_type<tc>, window_params = [{transform_indices = @transform_0, window_bounds = array<i64: 8, 784>}, {pipeline_mode = #tpu.pipeline_mode<synchronous>, transform_indices = @transform_1, window_bounds = array<i64: 784, 32>}, {pipeline_mode = #tpu.pipeline_mode<synchronous>, transform_indices = @transform_2, window_bounds = array<i64: 1, 32>}, {transform_indices = @transform_3, window_bounds = array<i64: 8, 32>}]} {
    %c0 = arith.constant 0 : index
    %c0_0 = arith.constant 0 : index
    %0 = vector.load %arg1[%c0, %c0_0] : memref<8x784xbf16, #tpu.memory_space<vmem>>, vector<8x784xbf16>
    %c0_1 = arith.constant 0 : index
    %c0_2 = arith.constant 0 : index
    %1 = vector.load %arg2[%c0_1, %c0_2] : memref<784x32xbf16, #tpu.memory_space<vmem>>, vector<784x32xbf16>
    %cst = arith.constant dense<0.000000e+00> : vector<8x32xf32>
    %2 = tpu.matmul %0, %1, %cst {dimension_numbers = #tpu.dot_dimension_numbers<[1], [0], [0], [1], [0, 0, 1, 1], [], []>} : vector<8x784xbf16>, vector<784x32xbf16>, vector<8x32xf32> -> vector<8x32xf32>
    %c0_3 = arith.constant 0 : index
    %c0_4 = arith.constant 0 : index
    %3 = vector.load %arg3[%c0_3, %c0_4] : memref<1x32xf32, #tpu.memory_space<vmem>>, vector<1x32xf32>
    %4 = vector.broadcast %3 : vector<1x32xf32> to vector<8x32xf32>
    %5 = arith.addf %2, %4 : vector<8x32xf32>
    %cst_5 = arith.constant 5.000000e-01 : f32
    %6 = vector.broadcast %cst_5 : f32 to vector<8x32xf32>
    %7 = arith.mulf %6, %5 : vector<8x32xf32>
    %cst_6 = arith.constant 0.707106769 : f32
    %8 = vector.broadcast %cst_6 : f32 to vector<8x32xf32>
    %9 = arith.mulf %5, %8 : vector<8x32xf32>
    %10 = math.erf %9 : vector<8x32xf32>
    %cst_7 = arith.constant 1.000000e+00 : f32
    %11 = vector.broadcast %cst_7 : f32 to vector<8x32xf32>
    %12 = arith.addf %11, %10 : vector<8x32xf32>
    %13 = arith.mulf %7, %12 : vector<8x32xf32>
    %c0_8 = arith.constant 0 : index
    %c0_9 = arith.constant 0 : index
    %14 = vector.load %arg4[%c0_8, %c0_9] : memref<8x32xf32, #tpu.memory_space<vmem>>, vector<8x32xf32>
    tpu.vector_store %arg4[%c0_8, %c0_9], %13 {strides = array<i32>} : memref<8x32xf32, #tpu.memory_space<vmem>>, vector<8x32xf32>,
    return
  }
  func.func @transform_0(%arg0: i32) -> (i32, i32) {
    %c0_i32 = arith.constant 0 : i32
    %c0_i32_0 = arith.constant 0 : i32
    return %arg0, %c0_i32 : i32, i32
  }
  func.func @transform_1(%arg0: i32) -> (i32, i32) {
    %c0_i32 = arith.constant 0 : i32
    %c0_i32_0 = arith.constant 0 : i32
    %c0_i32_1 = arith.constant 0 : i32
    return %c0_i32, %c0_i32_0 : i32, i32
  }
  func.func @transform_2(%arg0: i32) -> (i32, i32) {
    %c0_i32 = arith.constant 0 : i32
    %c0_i32_0 = arith.constant 0 : i32
    %c0_i32_1 = arith.constant 0 : i32
    return %c0_i32, %c0_i32_0 : i32, i32
  }
  func.func @transform_3(%arg0: i32) -> (i32, i32) {
    %c0_i32 = arith.constant 0 : i32
    %c0_i32_0 = arith.constant 0 : i32
    return %arg0, %c0_i32 : i32, i32
  }
}

</mosaic_0001>

<bundles_post_ra>
// kernel: stupid_en_forward.3
= control target key start
LH: loop header
LB: loop body
LE: loop exit
PB: predicated region body
PF: predicated region fallthrough
CT: control target
= control target key end

     0   :  { %v667_v0 = vmov 0   ;;  %vm210_vm0 = vcmask 556032   ;;  %vm235_vm1 = vcmask 1041408   ;;  %vm480_vm2 = vcmask 60416   ;;  %s938_s1 = inlined_call_operand.vmem [shape: bf16[196,8], index: 1, kind: input, shape index: {}]   ;;  %s939_s0 = inlined_call_operand.vmem [shape: bf16[128,196], index: 0, kind: input, shape index: {}]   ;;  %s940_s2 = inlined_call_operand.vmem [shape: f32[1,8], index: 2, kind: input, shape index: {}]   ;;  %s941_s3 = inlined_call_operand.vmem [shape: bf16[128,8], index: 3, kind: output, shape index: {}]  }
   0x1   :  { %239 = vmatprep.subr.bf16.mxu0 %v667_v0  ;;  %571 = vmatprep.subr.bf16.mxu1 %v667_v0  ;;  %v598_v1 = vld [vmem:[%s938_s1 + $0x38] sm:$0xff]   ;;  %v599_v2 = vld [vmem:[%s938_s1 + $0x30] sm:$0xff]   ;;  %v600_v3 = vld [vmem:[%s938_s1 + $0x28] sm:$0xff]  }
   0x2   :  { %240 = vmatpush1.bf16.msra.mxu0 %v598_v1  ;;  %584 = vmatpush1.bf16.msra.mxu1 %v598_v1  ;;  %v601_v4 = vld [vmem:[%s938_s1 + $0x20] sm:$0xff]   ;;  %v602_v6 = vld [vmem:[%s938_s1 + $0x18] sm:$0xff]   ;;  %v603_v8 = vld [vmem:[%s938_s1 + $0x10] sm:$0xff]  }
   0x3   :  { %241 = vmatprep.subr.bf16.mxu0 %v667_v0  ;;  %572 = vmatprep.subr.bf16.mxu1 %v667_v0  ;;  %v613_v5 = vld [vmem:[%s939_s0 + $0x4] ss:$8 sps:$4 sm:$0xff]   ;;  %v606_v11 = vld [vmem:[%s938_s1 + $0x60] ss:$0 sps:$4 sm:$0x33]   ;;  %v607_v13 = vld [vmem:[%s938_s1 + $0x58] sm:$0xff]  }
   0x4   :  { %v616_v7 = vld [vmem:[%s939_s0 + $0x44] ss:$8 sps:$4 sm:$0xff]   ;;  %531 = vmatprep.mubr.msk.bf16.mxu0 %vm210_vm0, %v613_v5  ;;  %v237_v12 = vsel %vm235_vm1, %v606_v11, 0  ;;  %v608_v14 = vld [vmem:[%s938_s1 + $0x50] sm:$0xff]   ;;  %v611_v17 = vld [vmem:[%s939_s0] ss:$8 sps:$4 sm:$0xff]  }
   0x5   :  { %535 = vmatprep.mubr.msk.bf16.mxu1 %vm210_vm0, %v616_v7  ;;  %v604_v9 = vld [vmem:[%s938_s1 + $0x8] sm:$0xff]   ;;  %v605_v10 = vld [vmem:[%s938_s1] sm:$0xff]   ;;  %v617_v19 = vld [vmem:[%s939_s0 + $0x14] ss:$8 sps:$4 sm:$0xff]  }
   0x6   :  { %242 = vmatpush1.bf16.msra.mxu0 %v599_v2  ;;  %585 = vmatpush1.bf16.msra.mxu1 %v599_v2  ;;  %v609_v15 = vld [vmem:[%s938_s1 + $0x48] sm:$0xff]   ;;  %v610_v16 = vld [vmem:[%s938_s1 + $0x40] sm:$0xff]   ;;  %v619_v20 = vld [vmem:[%s939_s0 + $0x54] ss:$8 sps:$4 sm:$0xff]  }
   0x7   :  { %243 = vmatprep.subr.bf16.mxu0 %v667_v0  ;;  %573 = vmatprep.subr.bf16.mxu1 %v667_v0  ;;  %v614_v18 = vld [vmem:[%s939_s0 + $0x40] ss:$8 sps:$4 sm:$0xff]   ;;  %v621_v21 = vld [vmem:[%s939_s0 + $0x10] ss:$8 sps:$4 sm:$0xff]   ;;  %v623_v23 = vld [vmem:[%s939_s0 + $0x24] ss:$8 sps:$4 sm:$0xff]  }
   0x8   :  { %v622_v22 = vld [vmem:[%s939_s0 + $0x50] ss:$8 sps:$4 sm:$0xff]   ;;  %v625_v24 = vld [vmem:[%s939_s0 + $0x64] ss:$8 sps:$4 sm:$0xff]   ;;  %v627_v25 = vld [vmem:[%s939_s0 + $0x20] ss:$8 sps:$4 sm:$0xff]  }
   0x9   :  { %v628_v26 = vld [vmem:[%s939_s0 + $0x60] ss:$8 sps:$4 sm:$0xff]   ;;  %v629_v27 = vld [vmem:[%s939_s0 + $0x34] ss:$8 sps:$4 sm:$0xff]   ;;  %v633_v29 = vld [vmem:[%s939_s0 + $0x30] ss:$8 sps:$4 sm:$0xff]  }
   0xa   :  { %244 = vmatpush1.bf16.msra.mxu0 %v600_v3  ;;  %586 = vmatpush1.bf16.msra.mxu1 %v600_v3  ;;  %v631_v28 = vld [vmem:[%s939_s0 + $0x74] ss:$8 sps:$4 sm:$0xff]   ;;  %v634_v30 = vld [vmem:[%s939_s0 + $0x70] ss:$8 sps:$4 sm:$0xff]   ;;  %v812_v31 = vld [vmem:[%s940_s2] ss:$0 sm:$0xff] }
   0xb   :  { %245 = vmatprep.subr.bf16.mxu0 %v667_v0  ;;  %574 = vmatprep.subr.bf16.mxu1 %v667_v0 }
   0xe   :  { %246 = vmatpush1.bf16.msra.mxu0 %v601_v4  ;;  %587 = vmatpush1.bf16.msra.mxu1 %v601_v4 }
   0xf   :  { %247 = vmatprep.subr.bf16.mxu0 %v667_v0  ;;  %575 = vmatprep.subr.bf16.mxu1 %v667_v0 }
  0x12   :  { %248 = vmatpush1.bf16.msra.mxu0 %v602_v6  ;;  %588 = vmatpush1.bf16.msra.mxu1 %v602_v6 }
  0x13   :  { %249 = vmatprep.subr.bf16.mxu0 %v667_v0  ;;  %576 = vmatprep.subr.bf16.mxu1 %v667_v0 }
  0x16   :  { %250 = vmatpush1.bf16.msra.mxu0 %v603_v8  ;;  %589 = vmatpush1.bf16.msra.mxu1 %v603_v8 }
  0x17   :  { %251 = vmatprep.subr.bf16.mxu0 %v667_v0  ;;  %577 = vmatprep.subr.bf16.mxu1 %v667_v0 }
  0x1a   :  { %252 = vmatpush1.bf16.msra.mxu0 %v604_v9  ;;  %590 = vmatpush1.bf16.msra.mxu1 %v604_v9 }
  0x1b   :  { %253 = vmatprep.subr.bf16.mxu0 %v667_v0  ;;  %578 = vmatprep.subr.bf16.mxu1 %v667_v0 }
  0x1e   :  { %254 = vmatpush1.bf16.msra.mxu0 %v605_v10  ;;  %591 = vmatpush1.bf16.msra.mxu1 %v605_v10 }
  0x1f   :  { %261 = vmatprep.subr.bf16.mxu0 %v667_v0  ;;  %579 = vmatprep.subr.bf16.mxu1 %v667_v0 }
  0x22   :  { %262 = vmatpush2.bf16.msra.mxu0 %v237_v12  ;;  %592 = vmatpush2.bf16.msra.mxu1 %v237_v12 }
  0x23   :  { %263 = vmatprep.subr.bf16.mxu0 %v667_v0  ;;  %580 = vmatprep.subr.bf16.mxu1 %v667_v0 }
  0x26   :  { %264 = vmatpush2.bf16.msra.mxu0 %v607_v13  ;;  %593 = vmatpush2.bf16.msra.mxu1 %v607_v13 }
  0x27   :  { %265 = vmatprep.subr.bf16.mxu0 %v667_v0  ;;  %581 = vmatprep.subr.bf16.mxu1 %v667_v0 }
  0x2a   :  { %266 = vmatpush2.bf16.msra.mxu0 %v608_v14  ;;  %594 = vmatpush2.bf16.msra.mxu1 %v608_v14 }
  0x2b   :  { %267 = vmatprep.subr.bf16.mxu0 %v667_v0  ;;  %582 = vmatprep.subr.bf16.mxu1 %v667_v0 }
  0x2e   :  { %268 = vmatpush2.bf16.msra.mxu0 %v609_v15  ;;  %595 = vmatpush2.bf16.msra.mxu1 %v609_v15 }
  0x2f   :  { %269 = vmatprep.subr.bf16.mxu0 %v667_v0  ;;  %583 = vmatprep.subr.bf16.mxu1 %v667_v0 }
  0x32   :  { %270 = vmatpush2.bf16.msra.mxu0 %v610_v16  ;;  %596 = vmatpush2.bf16.msra.mxu1 %v610_v16 }
  0x35   :  { %272 = vmatmul.mubr.bf16.vlgmr.msra.gmra.mxu0 %v611_v17  ;;  %304 = vmatmul.mubr.bf16.vlgmr.msra.gmra.mxu1 %v614_v18 }
  0x36   :  { %532 = vmatprep.mubr.msk.bf16.mxu0 %vm210_vm0, %v617_v19  ;;  %536 = vmatprep.mubr.msk.bf16.mxu1 %vm210_vm0, %v619_v20 }
  0x3d   :  { %280 = vmatmul.mubr.bf16.gmra.mxu0 %v621_v21  ;;  %312 = vmatmul.mubr.bf16.gmra.mxu1 %v622_v22 }
  0x3e   :  { %533 = vmatprep.mubr.msk.bf16.mxu0 %vm210_vm0, %v623_v23  ;;  %537 = vmatprep.mubr.msk.bf16.mxu1 %vm210_vm0, %v625_v24 }
  0x45   :  { %288 = vmatmul.mubr.bf16.gmra.mxu0 %v627_v25  ;;  %320 = vmatmul.mubr.bf16.gmra.mxu1 %v628_v26 }
  0x46   :  { %534 = vmatprep.mubr.msk.bf16.mxu0 %vm210_vm0, %v629_v27  ;;  %538 = vmatprep.mubr.msk.bf16.mxu1 %vm210_vm0, %v631_v28 }
  0x4d   :  { %296 = vmatmul.mubr.bf16.gmra.mxu0 %v633_v29  ;;  %328 = vmatmul.mubr.bf16.gmra.mxu1 %v634_v30 }
  0xf5   :  { %v273_v32 = vpop.f32.mrf.mxu0  ;;  %v305_v33 = vpop.f32.mrf.mxu1 }
  0xf6   :  { %v274_v34 = vadd.f32 %v812_v31, %v273_v32  ;;  %v306_v35 = vadd.f32 %v812_v31, %v305_v33 }
  0xf7   :  { %v275_v36 = vpop.f32.mrf.mxu0  ;;  %v307_v37 = vpop.f32.mrf.mxu1 }
  0xf8   :  { %v352_v38 = vmul.f32 0.70710677, %v274_v34  ;;  %v360_v39 = vmul.f32 0.70710677, %v306_v35  ;;  %v336_v8 = vmul.f32 0.5, %v274_v34  ;;  %v344_v11 = vmul.f32 0.5, %v306_v35 }
  0xf9   :  { %v276_v40 = vpop.f32.mrf.mxu0  ;;  %v308_v41 = vpop.f32.mrf.mxu1 }
  0xfa   :  { %635 = verf.f32 %v352_v38  ;;  %v277_v42 = vadd.f32 %v812_v31, %v276_v40  ;;  %v309_v43 = vadd.f32 %v812_v31, %v308_v41 }
  0xfb   :  { %637 = verf.f32 %v360_v39  ;;  %v278_v44 = vpop.f32.mrf.mxu0  ;;  %v310_v45 = vpop.f32.mrf.mxu1 }
  0xfc   :  { %v353_v46 = vmul.f32 0.70710677, %v277_v42  ;;  %v361_v47 = vmul.f32 0.70710677, %v309_v43  ;;  %v337_v25 = vmul.f32 0.5, %v277_v42  ;;  %v345_v29 = vmul.f32 0.5, %v309_v43 }
  0xfd   :  { %v281_v48 = vpop.f32.mrf.mxu0  ;;  %v313_v49 = vpop.f32.mrf.mxu1 }
  0xfe   :  { %639 = verf.f32 %v353_v46  ;;  %v819_v50 = vadd.f32 %v812_v31, %v281_v48  ;;  %v822_v51 = vadd.f32 %v812_v31, %v313_v49 }
  0xff   :  { %641 = verf.f32 %v361_v47  ;;  %v283_v52 = vpop.f32.mrf.mxu0  ;;  %v315_v53 = vpop.f32.mrf.mxu1 }
 0x100   :  { %v354_v54 = vmul.f32 0.70710677, %v819_v50  ;;  %v362_v55 = vmul.f32 0.70710677, %v822_v51  ;;  %v338_v44 = vmul.f32 0.5, %v819_v50  ;;  %v346_v48 = vmul.f32 0.5, %v822_v51 }
 0x101   :  { %v284_v56 = vpop.f32.mrf.mxu0  ;;  %v316_v57 = vpop.f32.mrf.mxu1 }
 0x102   :  { %643 = verf.f32 %v354_v54  ;;  %v827_v58 = vadd.f32 %v812_v31, %v284_v56  ;;  %v830_v59 = vadd.f32 %v812_v31, %v316_v57 }
 0x103   :  { %645 = verf.f32 %v362_v55  ;;  %v286_v60 = vpop.f32.mrf.mxu0  ;;  %v318_v61 = vpop.f32.mrf.mxu1 }
 0x104   :  { %v355_v62 = vmul.f32 0.70710677, %v827_v58  ;;  %v363_v63 = vmul.f32 0.70710677, %v830_v59 }
 0x105   :  { %v289_v0 = vpop.f32.mrf.mxu0  ;;  %v321_v1 = vpop.f32.mrf.mxu1 }
 0x106   :  { %647 = verf.f32 %v355_v62  ;;  %v835_v2 = vadd.f32 %v812_v31, %v289_v0  ;;  %v838_v3 = vadd.f32 %v812_v31, %v321_v1  ;;  %v339_v0 = vmul.f32 0.5, %v827_v58 }
 0x107   :  { %v636_v4 = vpop.eup %635  ;;  %649 = verf.f32 %v363_v63  ;;  %v291_v5 = vpop.f32.mrf.mxu0 }
 0x108   :  { %v323_v6 = vpop.f32.mrf.mxu1  ;;  %v638_v7 = vpop.eup %637  ;;  %v384_v9 = vadd.f32 1.0, %v636_v4  ;;  %v356_v10 = vmul.f32 0.70710677, %v835_v2  ;;  %v364_v13 = vmul.f32 0.70710677, %v838_v3 }
 0x109   :  { %v392_v12 = vadd.f32 1.0, %v638_v7  ;;  %v292_v14 = vpop.f32.mrf.mxu0 }
 0x10a   :  { %v324_v15 = vpop.f32.mrf.mxu1  ;;  %v400_v16 = vmul.f32 %v384_v9, %v336_v8  ;;  %651 = verf.f32 %v356_v10  ;;  %v843_v17 = vadd.f32 %v812_v31, %v292_v14  ;;  %v348_v14 = vmul.f32 0.5, %v838_v3 }
 0x10b   :  { %v846_v18 = vadd.f32 %v812_v31, %v324_v15  ;;  %v640_v19 = vpop.eup %639  ;;  %v408_v20 = vmul.f32 %v392_v12, %v344_v11  ;;  %653 = verf.f32 %v364_v13  ;;  %v294_v21 = vpop.f32.mrf.mxu0  ;;  %v340_v11 = vmul.f32 0.5, %v835_v2 }
 0x10c   :  { %v326_v22 = vpop.f32.mrf.mxu1  ;;  %v642_v23 = vpop.eup %641  ;;  %v555_v24 = vpack.c.bf16 %v400_v16, %v400_v16  ;;  %v385_v26 = vadd.f32 1.0, %v640_v19  ;;  %v357_v27 = vmul.f32 0.70710677, %v843_v17 }
 0x10d   :  { %v563_v28 = vpack.c.bf16 %v408_v20, %v408_v20  ;;  %v393_v30 = vadd.f32 1.0, %v642_v23  ;;  %v365_v32 = vmul.f32 0.70710677, %v846_v18  ;;  %v297_v33 = vpop.f32.mrf.mxu0  ;;  %v341_v22 = vmul.f32 0.5, %v843_v17 }
 0x10e   :  { %v329_v34 = vpop.f32.mrf.mxu1  ;;  %481 = vst.msk [vmem:[%s941_s3] sm:$0xf] %vm480_vm2, %v555_v24  ;;  %v401_v35 = vmul.f32 %v385_v26, %v337_v25  ;;  %655 = verf.f32 %v357_v27  ;;  %v855_v36 = vadd.f32 %v812_v31, %v297_v33  ;;  %v349_v24 = vmul.f32 0.5, %v846_v18 }
 0x10f   :  { %v858_v37 = vadd.f32 %v812_v31, %v329_v34  ;;  %v644_v38 = vpop.eup %643  ;;  %489 = vst.msk [vmem:[%s941_s3 + $0x20] sm:$0xf] %vm480_vm2, %v563_v28  ;;  %v409_v39 = vmul.f32 %v393_v30, %v345_v29  ;;  %657 = verf.f32 %v365_v32  ;;  %v299_v40 = vpop.f32.mrf.mxu0 }
 0x110   :  { %v331_v41 = vpop.f32.mrf.mxu1  ;;  %v646_v42 = vpop.eup %645  ;;  %v556_v43 = vpack.c.bf16 %v401_v35, %v401_v35  ;;  %v386_v45 = vadd.f32 1.0, %v644_v38  ;;  %v358_v46 = vmul.f32 0.70710677, %v855_v36  ;;  %v342_v30 = vmul.f32 0.5, %v855_v36 }
 0x111   :  { %v564_v47 = vpack.c.bf16 %v409_v39, %v409_v39  ;;  %v394_v49 = vadd.f32 1.0, %v646_v42  ;;  %v366_v52 = vmul.f32 0.70710677, %v858_v37  ;;  %v300_v53 = vpop.f32.mrf.mxu0  ;;  %v350_v33 = vmul.f32 0.5, %v858_v37 }
 0x112   :  { %v332_v54 = vpop.f32.mrf.mxu1  ;;  %482 = vst.msk [vmem:[%s941_s3 + $0x4] sm:$0xf] %vm480_vm2, %v556_v43  ;;  %v402_v55 = vmul.f32 %v386_v45, %v338_v44  ;;  %659 = verf.f32 %v358_v46  ;;  %v301_v50 = vadd.f32 %v812_v31, %v300_v53 }
 0x113   :  { %v874_v56 = vadd.f32 %v812_v31, %v332_v54  ;;  %v648_v57 = vpop.eup %647  ;;  %490 = vst.msk [vmem:[%s941_s3 + $0x24] sm:$0xf] %vm480_vm2, %v564_v47  ;;  %v410_v51 = vmul.f32 %v394_v49, %v346_v48  ;;  %661 = verf.f32 %v366_v52  ;;  %v302_v60 = vpop.f32.mrf.mxu0  ;;  %v347_v31 = vmul.f32 0.5, %v830_v59 }
 0x114   :  { %v334_v61 = vpop.f32.mrf.mxu1  ;;  %v650_v62 = vpop.eup %649  ;;  %v557_v63 = vpack.c.bf16 %v402_v55, %v402_v55  ;;  %v387_v1 = vadd.f32 1.0, %v648_v57  ;;  %v359_v4 = vmul.f32 0.70710677, %v301_v50  ;;  %v343_v41 = vmul.f32 0.5, %v301_v50 }
 0x115   :  { %v565_v5 = vpack.c.bf16 %v410_v51, %v410_v51  ;;  %v395_v6 = vadd.f32 1.0, %v650_v62  ;;  %v367_v7 = vmul.f32 0.70710677, %v874_v56  ;;  %v351_v37 = vmul.f32 0.5, %v874_v56 }
 0x116   :  { %483 = vst.msk [vmem:[%s941_s3 + $0x8] sm:$0xf] %vm480_vm2, %v557_v63  ;;  %v403_v8 = vmul.f32 %v387_v1, %v339_v0  ;;  %663 = verf.f32 %v359_v4 }
 0x117   :  { %v652_v9 = vpop.eup %651  ;;  %491 = vst.msk [vmem:[%s941_s3 + $0x28] sm:$0xf] %vm480_vm2, %v565_v5  ;;  %v411_v58 = vmul.f32 %v395_v6, %v347_v31  ;;  %665 = verf.f32 %v367_v7 }
 0x118   :  { %v654_v10 = vpop.eup %653  ;;  %v558_v59 = vpack.c.bf16 %v403_v8, %v403_v8  ;;  %v388_v12 = vadd.f32 1.0, %v652_v9 }
 0x119   :  { %v566_v13 = vpack.c.bf16 %v411_v58, %v411_v58  ;;  %v396_v15 = vadd.f32 1.0, %v654_v10 }
 0x11a   :  { %484 = vst.msk [vmem:[%s941_s3 + $0xc] sm:$0xf] %vm480_vm2, %v558_v59  ;;  %v404_v16 = vmul.f32 %v388_v12, %v340_v11 }
 0x11b   :  { %v656_v19 = vpop.eup %655  ;;  %492 = vst.msk [vmem:[%s941_s3 + $0x2c] sm:$0xf] %vm480_vm2, %v566_v13  ;;  %v412_v20 = vmul.f32 %v396_v15, %v348_v14 }
 0x11c   :  { %v658_v21 = vpop.eup %657  ;;  %v559_v2 = vpack.c.bf16 %v404_v16, %v404_v16  ;;  %v389_v23 = vadd.f32 1.0, %v656_v19 }
 0x11d   :  { %v567_v3 = vpack.c.bf16 %v412_v20, %v412_v20  ;;  %v397_v25 = vadd.f32 1.0, %v658_v21 }
 0x11e   :  { %485 = vst.msk [vmem:[%s941_s3 + $0x10] sm:$0xf] %vm480_vm2, %v559_v2  ;;  %v405_v26 = vmul.f32 %v389_v23, %v341_v22 }
 0x11f   :  { %v660_v27 = vpop.eup %659  ;;  %493 = vst.msk [vmem:[%s941_s3 + $0x30] sm:$0xf] %vm480_vm2, %v567_v3  ;;  %v413_v28 = vmul.f32 %v397_v25, %v349_v24 }
 0x120   :  { %v662_v29 = vpop.eup %661  ;;  %v560_v17 = vpack.c.bf16 %v405_v26, %v405_v26  ;;  %v390_v32 = vadd.f32 1.0, %v660_v27 }
 0x121   :  { %v568_v18 = vpack.c.bf16 %v413_v28, %v413_v28  ;;  %v398_v34 = vadd.f32 1.0, %v662_v29 }
 0x122   :  { %486 = vst.msk [vmem:[%s941_s3 + $0x14] sm:$0xf] %vm480_vm2, %v560_v17  ;;  %v406_v35 = vmul.f32 %v390_v32, %v342_v30 }
 0x123   :  { %v664_v38 = vpop.eup %663  ;;  %494 = vst.msk [vmem:[%s941_s3 + $0x34] sm:$0xf] %vm480_vm2, %v568_v18  ;;  %v414_v39 = vmul.f32 %v398_v34, %v350_v33 }
 0x124   :  { %v666_v40 = vpop.eup %665  ;;  %v561_v36 = vpack.c.bf16 %v406_v35, %v406_v35  ;;  %v391_v42 = vadd.f32 1.0, %v664_v38 }
 0x125   :  { %v569_v43 = vpack.c.bf16 %v414_v39, %v414_v39  ;;  %v399_v44 = vadd.f32 1.0, %v666_v40 }
 0x126   :  { %487 = vst.msk [vmem:[%s941_s3 + $0x18] sm:$0xf] %vm480_vm2, %v561_v36  ;;  %v407_v45 = vmul.f32 %v391_v42, %v343_v41 }
 0x127   :  { %495 = vst.msk [vmem:[%s941_s3 + $0x38] sm:$0xf] %vm480_vm2, %v569_v43  ;;  %v415_v46 = vmul.f32 %v399_v44, %v351_v37 }
 0x128   :  { %v562_v47 = vpack.c.bf16 %v407_v45, %v407_v45 }
 0x129   :  { %v570_v48 = vpack.c.bf16 %v415_v46, %v415_v46 }
 0x12a   :  { %488 = vst.msk [vmem:[%s941_s3 + $0x1c] sm:$0xf] %vm480_vm2, %v562_v47 }
 0x12b   :  { %496 = vst.msk [vmem:[%s941_s3 + $0x3c] sm:$0xf] %vm480_vm2, %v570_v48 }

// kernel: stupid_en_forward.4
= control target key start
LH: loop header
LB: loop body
LE: loop exit
PB: predicated region body
PF: predicated region fallthrough
CT: control target
= control target key end

     0   :  { %v536_v0 = vmov 0   ;;  %vm264_vm0 = vcmask 64512   ;;  %vm271_vm1 = vcmask 1043456   ;;  %vm409_vm2 = vcmask 125952   ;;  %s686_s1 = inlined_call_operand.vmem [shape: bf16[392,16], index: 1, kind: input, shape index: {}]   ;;  %s687_s0 = inlined_call_operand.vmem [shape: bf16[32,392], index: 0, kind: input, shape index: {}]   ;;  %s688_s2 = inlined_call_operand.vmem [shape: f32[1,16], index: 2, kind: input, shape index: {}]   ;;  %s689_s3 = inlined_call_operand.vmem [shape: bf16[32,16], index: 3, kind: output, shape index: {}]  }
   0x1   :  { %324 = vmatprep.subr.bf16.mxu1 %v536_v0  ;;  %v491_v1 = vld [vmem:[%s686_s1 + $0x78] sm:$0xff]   ;;  %v494_v4 = vld [vmem:[%s686_s1 + $0x70] sm:$0xff]   ;;  %v497_v7 = vld [vmem:[%s686_s1 + $0x68] sm:$0xff]  }
   0x2   :  { %v492_v2 = vld [vmem:[%s686_s1 + $0xb8] sm:$0xff]   ;;  %462 = vmatprep.subr.bf16.mxu0 %v491_v1  ;;  %v495_v5 = vld [vmem:[%s686_s1 + $0xb0] sm:$0xff]   ;;  %v498_v8 = vld [vmem:[%s686_s1 + $0xa8] sm:$0xff]  }
   0x3   :  { %v493_v3 = vld [vmem:[%s686_s1 + $0x38] sm:$0xff]   ;;  %325 = vmatpush1.bf16.msra.mxu1 %v492_v2  ;;  %v496_v6 = vld [vmem:[%s686_s1 + $0x30] sm:$0xff]   ;;  %v499_v9 = vld [vmem:[%s686_s1 + $0x28] sm:$0xff]  }
   0x4   :  { %463 = vmatpush3.bf16.msra.mxu0 %v493_v3  ;;  %326 = vmatprep.subr.bf16.mxu1 %v536_v0  ;;  %v500_v10 = vld [vmem:[%s686_s1 + $0x60] sm:$0xff]   ;;  %v503_v13 = vld [vmem:[%s686_s1 + $0x58] sm:$0xff]   ;;  %v506_v16 = vld [vmem:[%s686_s1 + $0x50] sm:$0xff]  }
   0x5   :  { %464 = vmatprep.subr.bf16.mxu0 %v494_v4  ;;  %v501_v11 = vld [vmem:[%s686_s1 + $0xa0] sm:$0xff]   ;;  %v504_v14 = vld [vmem:[%s686_s1 + $0x98] sm:$0xff]   ;;  %v507_v17 = vld [vmem:[%s686_s1 + $0x90] sm:$0xff]  }
   0x6   :  { %v502_v12 = vld [vmem:[%s686_s1 + $0x20] sm:$0xff]   ;;  %v505_v15 = vld [vmem:[%s686_s1 + $0x18] sm:$0xff]   ;;  %v508_v18 = vld [vmem:[%s686_s1 + $0x10] sm:$0xff]  }
   0x7   :  { %327 = vmatpush1.bf16.msra.mxu1 %v495_v5  ;;  %v509_v19 = vld [vmem:[%s686_s1 + $0x48] sm:$0xff]   ;;  %v512_v22 = vld [vmem:[%s686_s1 + $0x40] sm:$0xff]  }
   0x8   :  { %465 = vmatpush3.bf16.msra.mxu0 %v496_v6  ;;  %328 = vmatprep.subr.bf16.mxu1 %v536_v0  ;;  %v510_v20 = vld [vmem:[%s686_s1 + $0x88] sm:$0xff]   ;;  %v517_v23 = vld [vmem:[%s687_s0 + $0x4] ss:$16 sps:$4 sm:$0xff]   ;;  %v518_v27 = vld [vmem:[%s686_s1 + $0xc0] ss:$0 sps:$4 sm:$0xff]  }
   0x9   :  { %466 = vmatprep.subr.bf16.mxu0 %v497_v7  ;;  %v511_v21 = vld [vmem:[%s686_s1 + $0x8] sm:$0xff]   ;;  %v513_v24 = vld [vmem:[%s686_s1 + $0x80] sm:$0xff]   ;;  %307 = vmatprep.mubr.bf16.mxu0 %v517_v23  ;;  %v273_v29 = vsel %vm271_vm1, %v518_v27, 0 }
   0xa   :  { %v521_v25 = vld [vmem:[%s687_s0 + $0xc] ss:$16 sps:$4 sm:$0xff]   ;;  %v514_v26 = vld [vmem:[%s686_s1] sm:$0xff]   ;;  %v519_v31 = vld [vmem:[%s687_s0 + $0x8] ss:$16 sps:$4 sm:$0xff]  }
   0xb   :  { %329 = vmatpush1.bf16.msra.mxu1 %v498_v8  ;;  %452 = vmatprep.mubr.msk.bf16.mxu1 %vm264_vm0, %v521_v25  ;;  %v515_v28 = vld [vmem:[%s687_s0] ss:$16 sps:$4 sm:$0xff]   ;;  %v522_v30 = vld [vmem:[%s687_s0 + $0x24] ss:$16 sps:$4 sm:$0xff]   ;;  %v525_v32 = vld [vmem:[%s687_s0 + $0x2c] ss:$16 sps:$4 sm:$0xff]  }
   0xc   :  { %467 = vmatpush3.bf16.msra.mxu0 %v499_v9  ;;  %330 = vmatprep.subr.bf16.mxu1 %v536_v0  ;;  %v524_v33 = vld [vmem:[%s687_s0 + $0x20] ss:$16 sps:$4 sm:$0xff]   ;;  %v527_v34 = vld [vmem:[%s687_s0 + $0x28] ss:$16 sps:$4 sm:$0xff]  }
   0xd   :  { %468 = vmatprep.subr.bf16.mxu0 %v500_v10  ;;  %v418_v37 = vld [vmem:[%s688_s2] ss:$0 sm:$0xff] }
   0xf   :  { %331 = vmatpush1.bf16.msra.mxu1 %v501_v11 }
  0x10   :  { %469 = vmatpush3.bf16.msra.mxu0 %v502_v12  ;;  %332 = vmatprep.subr.bf16.mxu1 %v536_v0 }
  0x11   :  { %470 = vmatprep.subr.bf16.mxu0 %v503_v13 }
  0x13   :  { %333 = vmatpush1.bf16.msra.mxu1 %v504_v14 }
  0x14   :  { %471 = vmatpush3.bf16.msra.mxu0 %v505_v15  ;;  %334 = vmatprep.subr.bf16.mxu1 %v536_v0 }
  0x15   :  { %472 = vmatprep.subr.bf16.mxu0 %v506_v16 }
  0x17   :  { %335 = vmatpush1.bf16.msra.mxu1 %v507_v17 }
  0x18   :  { %473 = vmatpush3.bf16.msra.mxu0 %v508_v18  ;;  %336 = vmatprep.subr.bf16.mxu1 %v536_v0 }
  0x19   :  { %474 = vmatprep.subr.bf16.mxu0 %v509_v19 }
  0x1b   :  { %337 = vmatpush1.bf16.msra.mxu1 %v510_v20 }
  0x1c   :  { %475 = vmatpush3.bf16.msra.mxu0 %v511_v21  ;;  %338 = vmatprep.subr.bf16.mxu1 %v536_v0 }
  0x1d   :  { %476 = vmatprep.subr.bf16.mxu0 %v512_v22 }
  0x1f   :  { %339 = vmatpush1.bf16.msra.mxu1 %v513_v24 }
  0x20   :  { %477 = vmatpush3.bf16.msra.mxu0 %v514_v26  ;;  %354 = vmatprep.subr.bf16.mxu1 %v536_v0 }
  0x23   :  { %308 = vmatmul.mubr.bf16.vlgmr.msra.gmra.mxu0 %v515_v28  ;;  %355 = vmatpush2.bf16.msra.mxu1 %v273_v29 }
  0x24   :  { %315 = vmatprep.mubr.bf16.mxu0 %v522_v30 }
  0x26   :  { %357 = vmatmul.mubr.bf16.vlgmr.msra.gmra.mxu1 %v519_v31 }
  0x27   :  { %453 = vmatprep.mubr.msk.bf16.mxu1 %vm264_vm0, %v525_v32 }
  0x2b   :  { %316 = vmatmul.mubr.bf16.gmra.mxu0 %v524_v33 }
  0x2e   :  { %365 = vmatmul.mubr.bf16.gmra.mxu1 %v527_v34 }
  0xe3   :  { %v478_v35 = vpop.f32.mrf.mxu0 }
  0xe5   :  { %v479_v36 = vpop.f32.mrf.mxu0 }
  0xe6   :  { %v480_v38 = vadd.f32 %v479_v36, %v478_v35  ;;  %v358_v39 = vpop.f32.mrf.mxu1 }
  0xe7   :  { %v481_v40 = vpop.f32.mrf.mxu0 }
  0xe8   :  { %v310_v41 = vadd.f32 %v480_v38, %v418_v37  ;;  %v360_v42 = vpop.f32.mrf.mxu1 }
  0xe9   :  { %v482_v43 = vpop.f32.mrf.mxu0 }
  0xea   :  { %v359_v44 = vadd.f32 %v358_v39, %v310_v41  ;;  %v483_v45 = vadd.f32 %v482_v43, %v481_v40  ;;  %v361_v46 = vpop.f32.mrf.mxu1 }
  0xeb   :  { %v484_v47 = vpop.f32.mrf.mxu0 }
  0xec   :  { %v377_v48 = vmul.f32 0.70710677, %v359_v44  ;;  %v313_v49 = vadd.f32 %v483_v45, %v418_v37  ;;  %v363_v50 = vpop.f32.mrf.mxu1  ;;  %v373_v5 = vmul.f32 0.5, %v359_v44 }
  0xed   :  { %v485_v51 = vpop.f32.mrf.mxu0 }
  0xee   :  { %528 = verf.f32 %v377_v48  ;;  %v362_v52 = vadd.f32 %v361_v46, %v313_v49  ;;  %v486_v53 = vadd.f32 %v485_v51, %v484_v47  ;;  %v366_v54 = vpop.f32.mrf.mxu1 }
  0xef   :  { %v487_v55 = vpop.f32.mrf.mxu0 }
  0xf0   :  { %v378_v56 = vmul.f32 0.70710677, %v362_v52  ;;  %v318_v57 = vadd.f32 %v486_v53, %v418_v37  ;;  %v368_v58 = vpop.f32.mrf.mxu1  ;;  %v374_v10 = vmul.f32 0.5, %v362_v52 }
  0xf1   :  { %v488_v59 = vpop.f32.mrf.mxu0 }
  0xf2   :  { %530 = verf.f32 %v378_v56  ;;  %v367_v60 = vadd.f32 %v366_v54, %v318_v57  ;;  %v489_v61 = vadd.f32 %v488_v59, %v487_v55  ;;  %v369_v62 = vpop.f32.mrf.mxu1 }
  0xf4   :  { %v379_v63 = vmul.f32 0.70710677, %v367_v60  ;;  %v321_v0 = vadd.f32 %v489_v61, %v418_v37  ;;  %v371_v1 = vpop.f32.mrf.mxu1  ;;  %v375_v15 = vmul.f32 0.5, %v367_v60 }
  0xf6   :  { %532 = verf.f32 %v379_v63  ;;  %v370_v2 = vadd.f32 %v369_v62, %v321_v0 }
  0xf8   :  { %v380_v3 = vmul.f32 0.70710677, %v370_v2  ;;  %v376_v20 = vmul.f32 0.5, %v370_v2 }
  0xfa   :  { %534 = verf.f32 %v380_v3 }
  0xfb   :  { %v529_v4 = vpop.eup %528 }
  0xfc   :  { %v385_v6 = vadd.f32 1.0, %v529_v4 }
  0xfe   :  { %v389_v7 = vmul.f32 %v385_v6, %v373_v5 }
  0xff   :  { %v531_v8 = vpop.eup %530 }
 0x100   :  { %v458_v9 = vpack.c.bf16 %v389_v7, %v389_v7  ;;  %v386_v11 = vadd.f32 1.0, %v531_v8 }
 0x102   :  { %410 = vst.msk [vmem:[%s689_s3] sm:$0xf] %vm409_vm2, %v458_v9  ;;  %v390_v12 = vmul.f32 %v386_v11, %v374_v10 }
 0x103   :  { %v533_v13 = vpop.eup %532 }
 0x104   :  { %v459_v14 = vpack.c.bf16 %v390_v12, %v390_v12  ;;  %v387_v16 = vadd.f32 1.0, %v533_v13 }
 0x106   :  { %411 = vst.msk [vmem:[%s689_s3 + $0x4] sm:$0xf] %vm409_vm2, %v459_v14  ;;  %v391_v17 = vmul.f32 %v387_v16, %v375_v15 }
 0x107   :  { %v535_v18 = vpop.eup %534 }
 0x108   :  { %v460_v19 = vpack.c.bf16 %v391_v17, %v391_v17  ;;  %v388_v21 = vadd.f32 1.0, %v535_v18 }
 0x10a   :  { %412 = vst.msk [vmem:[%s689_s3 + $0x8] sm:$0xf] %vm409_vm2, %v460_v19  ;;  %v392_v22 = vmul.f32 %v388_v21, %v376_v20 }
 0x10c   :  { %v461_v23 = vpack.c.bf16 %v392_v22, %v392_v22 }
 0x10e   :  { %413 = vst.msk [vmem:[%s689_s3 + $0xc] sm:$0xf] %vm409_vm2, %v461_v23 }

// kernel: stupid_en_forward.5
= control target key start
LH: loop header
LB: loop body
LE: loop exit
PB: predicated region body
PF: predicated region fallthrough
CT: control target
= control target key end

     0   :  { %v843_v43 = vmov 0.0   ;;  %vm844_vm0 = vmmov 0   ;;  %s1031_s0 = inlined_call_operand.vmem [shape: bf16[8,784], index: 0, kind: input, shape index: {}]   ;;  %s1032_s1 = inlined_call_operand.vmem [shape: bf16[784,32], index: 1, kind: input, shape index: {}]   ;;  %s1033_s2 = inlined_call_operand.vmem [shape: f32[1,32], index: 2, kind: input, shape index: {}]   ;;  %s1034_s3 = inlined_call_operand.hbm [shape: f32[8,32], index: 3, kind: output, shape index: {}]  }
   0x1   :  { %v763_v0 = vld [vmem:[%s1032_s1 + $0x78] sm:$0xff]   ;;  %v767_v4 = vld [vmem:[%s1032_s1 + $0x70] sm:$0xff]   ;;  %v771_v8 = vld [vmem:[%s1032_s1 + $0x68] sm:$0xff]  }
   0x2   :  { %v764_v1 = vld [vmem:[%s1032_s1 + $0x38] sm:$0xff]   ;;  %686 = vmatprep.subr.bf16.mxu0 %v763_v0  ;;  %v768_v5 = vld [vmem:[%s1032_s1 + $0x30] sm:$0xff]   ;;  %v772_v9 = vld [vmem:[%s1032_s1 + $0x28] sm:$0xff]  }
   0x3   :  { %v765_v2 = vld [vmem:[%s1032_s1 + $0xf8] sm:$0xff]   ;;  %687 = vmatpush3.bf16.msra.mxu0 %v764_v1  ;;  %v769_v6 = vld [vmem:[%s1032_s1 + $0xf0] sm:$0xff]   ;;  %v773_v10 = vld [vmem:[%s1032_s1 + $0xe8] sm:$0xff]  }
   0x4   :  { %v766_v3 = vld [vmem:[%s1032_s1 + $0xb8] sm:$0xff]   ;;  %708 = vmatprep.subr.bf16.mxu1 %v765_v2  ;;  %688 = vmatprep.subr.bf16.mxu0 %v767_v4  ;;  %v770_v7 = vld [vmem:[%s1032_s1 + $0xb0] sm:$0xff]   ;;  %v774_v11 = vld [vmem:[%s1032_s1 + $0xa8] sm:$0xff]  }
   0x5   :  { %709 = vmatpush3.bf16.msra.mxu1 %v766_v3  ;;  %v775_v12 = vld [vmem:[%s1032_s1 + $0x60] sm:$0xff]   ;;  %v779_v16 = vld [vmem:[%s1032_s1 + $0x58] sm:$0xff]   ;;  %v783_v20 = vld [vmem:[%s1032_s1 + $0x50] sm:$0xff]  }
   0x6   :  { %710 = vmatprep.subr.bf16.mxu1 %v769_v6  ;;  %v776_v13 = vld [vmem:[%s1032_s1 + $0x20] sm:$0xff]   ;;  %v780_v17 = vld [vmem:[%s1032_s1 + $0x18] sm:$0xff]   ;;  %v784_v21 = vld [vmem:[%s1032_s1 + $0x10] sm:$0xff]  }
   0x7   :  { %689 = vmatpush3.bf16.msra.mxu0 %v768_v5  ;;  %v777_v14 = vld [vmem:[%s1032_s1 + $0xe0] sm:$0xff]   ;;  %v781_v18 = vld [vmem:[%s1032_s1 + $0xd8] sm:$0xff]   ;;  %v785_v22 = vld [vmem:[%s1032_s1 + $0xd0] sm:$0xff]  }
   0x8   :  { %690 = vmatprep.subr.bf16.mxu0 %v771_v8  ;;  %v778_v15 = vld [vmem:[%s1032_s1 + $0xa0] sm:$0xff]   ;;  %v782_v19 = vld [vmem:[%s1032_s1 + $0x98] sm:$0xff]   ;;  %v786_v23 = vld [vmem:[%s1032_s1 + $0x90] sm:$0xff]  }
   0x9   :  { %711 = vmatpush3.bf16.msra.mxu1 %v770_v7  ;;  %v787_v24 = vld [vmem:[%s1032_s1 + $0x48] sm:$0xff]   ;;  %v791_v28 = vld [vmem:[%s1032_s1 + $0x40] sm:$0xff]   ;;  %v797_v35 = vld [vmem:[%s1032_s1 + $0x178] sm:$0xff]  }
   0xa   :  { %712 = vmatprep.subr.bf16.mxu1 %v773_v10  ;;  %v788_v25 = vld [vmem:[%s1032_s1 + $0x8] sm:$0xff]   ;;  %v792_v29 = vld [vmem:[%s1032_s1] sm:$0xff]   ;;  %v800_v39 = vld [vmem:[%s1032_s1 + $0x138] sm:$0xff]  }
   0xb   :  { %691 = vmatpush3.bf16.msra.mxu0 %v772_v9  ;;  %v789_v26 = vld [vmem:[%s1032_s1 + $0xc8] sm:$0xff]   ;;  %v793_v30 = vld [vmem:[%s1032_s1 + $0xc0] sm:$0xff]   ;;  %v801_v40 = vld [vmem:[%s1032_s1 + $0x170] sm:$0xff]  }
   0xc   :  { %692 = vmatprep.subr.bf16.mxu0 %v775_v12  ;;  %v790_v27 = vld [vmem:[%s1032_s1 + $0x88] sm:$0xff]   ;;  %v16_v31 = vld [vmem:[%s1031_s0] sm:$0xff]  ;;  %v802_v41 = vld [vmem:[%s1032_s1 + $0x130] sm:$0xff]  }
   0xd   :  { %713 = vmatpush3.bf16.msra.mxu1 %v774_v11  ;;  %v629_v32 = vcombine.low %v16_v31, %v16_v31  ;;  %v630_v33 = vcombine.high %v16_v31, %v16_v31  ;;  %v796_v34 = vld [vmem:[%s1032_s1 + $0x80] sm:$0xff]   ;;  %v17_v36 = vld [vmem:[%s1031_s0 + $0x8] sm:$0xff]  ;;  %v807_v47 = vld [vmem:[%s1032_s1 + $0x158] sm:$0xff]  }
   0xe   :  { %714 = vmatprep.subr.bf16.mxu1 %v777_v14  ;;  %v631_v37 = vcombine.low %v17_v36, %v17_v36  ;;  %v632_v38 = vcombine.high %v17_v36, %v17_v36  ;;  %v803_v42 = vld [vmem:[%s1032_s1 + $0x168] sm:$0xff]   ;;  %v805_v45 = vld [vmem:[%s1032_s1 + $0x160] sm:$0xff]   ;;  %v808_v48 = vld [vmem:[%s1032_s1 + $0x118] sm:$0xff]  }
   0xf   :  { %693 = vmatpush3.bf16.msra.mxu0 %v776_v13  ;;  %479 = vmatprep.mubr.bf16.mxu0 %v630_v33  ;;  %v804_v44 = vld [vmem:[%s1032_s1 + $0x128] sm:$0xff]   ;;  %v806_v46 = vld [vmem:[%s1032_s1 + $0x120] sm:$0xff]   ;;  %v809_v49 = vld [vmem:[%s1032_s1 + $0x150] sm:$0xff]  }
  0x10   :  { %694 = vmatprep.subr.bf16.mxu0 %v779_v16  ;;  %519 = vmatprep.mubr.bf16.mxu1 %v632_v38  ;;  %v815_v50 = vld [vmem:[%s1032_s1 + $0x180] sm:$0xff]   ;;  %v18_v51 = vld [vmem:[%s1031_s0 + $0x10] sm:$0xff]  ;;  %v818_v53 = vld [vmem:[%s1031_s0 + $0x18] ss:$0 sps:$4 sm:$0xff]  }
  0x11   :  { %715 = vmatpush3.bf16.msra.mxu1 %v778_v15  ;;  %v634_v52 = vcombine.high %v18_v51, %v18_v51 }
  0x12   :  { %716 = vmatprep.subr.bf16.mxu1 %v781_v18 }
  0x13   :  { %695 = vmatpush3.bf16.msra.mxu0 %v780_v17 }
  0x14   :  { %696 = vmatprep.subr.bf16.mxu0 %v783_v20 }
  0x15   :  { %717 = vmatpush3.bf16.msra.mxu1 %v782_v19 }
  0x16   :  { %718 = vmatprep.subr.bf16.mxu1 %v785_v22 }
  0x17   :  { %697 = vmatpush3.bf16.msra.mxu0 %v784_v21 }
  0x18   :  { %698 = vmatprep.subr.bf16.mxu0 %v787_v24 }
  0x19   :  { %719 = vmatpush3.bf16.msra.mxu1 %v786_v23 }
  0x1a   :  { %720 = vmatprep.subr.bf16.mxu1 %v789_v26 }
  0x1b   :  { %699 = vmatpush3.bf16.msra.mxu0 %v788_v25 }
  0x1c   :  { %700 = vmatprep.subr.bf16.mxu0 %v791_v28 }
  0x1d   :  { %721 = vmatpush3.bf16.msra.mxu1 %v790_v27 }
  0x1e   :  { %722 = vmatprep.subr.bf16.mxu1 %v793_v30 }
  0x1f   :  { %701 = vmatpush3.bf16.msra.mxu0 %v792_v29 }
  0x20   :  { %730 = vmatprep.subr.bf16.mxu0 %v797_v35 }
  0x21   :  { %723 = vmatpush3.bf16.msra.mxu1 %v796_v34 }
  0x22   :  { %480 = vmatmul.mubr.bf16.vlgmr.msra.gmra.mxu0 %v629_v32  ;;  %754 = vmatprep.subr.bf16.mxu1 %v843_v43 }
  0x23   :  { %731 = vmatpush3.bf16.msra.mxu0 %v800_v39 }
  0x24   :  { %520 = vmatmul.mubr.bf16.vlgmr.msra.gmra.mxu1 %v631_v37  ;;  %732 = vmatprep.subr.bf16.mxu0 %v801_v40 }
  0x25   :  { %756 = vmatprep.mubr.msk.bf16.mxu1 %vm844_vm0, %v843_v43 }
  0x27   :  { %733 = vmatpush3.bf16.msra.mxu0 %v802_v41 }
  0x28   :  { %734 = vmatprep.subr.bf16.mxu0 %v803_v42 }
  0x2b   :  { %735 = vmatpush3.bf16.msra.mxu0 %v804_v44 }
  0x2c   :  { %736 = vmatprep.subr.bf16.mxu0 %v805_v45 }
  0x2f   :  { %737 = vmatpush3.bf16.msra.mxu0 %v806_v46 }
  0x30   :  { %738 = vmatprep.subr.bf16.mxu0 %v807_v47 }
  0x31   :  { %8 = vsyncpa [#allocation3], 0  ;;  %755 = vmatpush3.bf16.msra.mxu1 %v815_v50  ;;  %vm443_vm1 = vcmask 130048   ;;  %v810_v54 = vld [vmem:[%s1032_s1 + $0x110] sm:$0xff]   ;;  %559 = vmatprep.mubr.bf16.mxu0 %v634_v52  ;;  %v811_v55 = vld [vmem:[%s1032_s1 + $0x148] sm:$0xff]   ;;  %v633_v59 = vcombine.low %v18_v51, %v18_v51  ;;  %vm612_vm2 = vcmask 261120  }
  0x32   :  { %v812_v56 = vld [vmem:[%s1032_s1 + $0x108] sm:$0xff]   ;;  %v813_v57 = vld [vmem:[%s1032_s1 + $0x140] sm:$0xff]  }
  0x33   :  { %739 = vmatpush3.bf16.msra.mxu0 %v808_v48  ;;  %v814_v58 = vld [vmem:[%s1032_s1 + $0x100] sm:$0xff]   ;;  %s845_s1 = smov [#allocation2]  }
  0x34   :  { %740 = vmatprep.subr.bf16.mxu0 %v809_v49  ;;  %757 = vmatmul.mubr.msk.bf16.vlgmr.msra.gmra.mxu1 %vm443_vm1, %v818_v53  ;;  %v628_v9 = vld [vmem:[%s1033_s2] ss:$0 sm:$0xff]  ;;  %s620_s11 = sshll.u32 %s845_s1, 4  ;;  %s621_s11 = int_to_ptr.vmem [resolvable:$true] %s620_s11 }
  0x35   :  { %s821_s2 = scalar_lea.vmem %s621_s11, 128  ;;  %p826_p1 = scmp.lt.s32.totalorder %s621_s11, %s621_s11 }
  0x36   :  { %p822_p0 = scmp.ne.s32.totalorder %s621_s11, %s821_s2  ;;  %p827_p2 = scmp.lt.s32.totalorder %s821_s2, %s821_s2 }
  0x37   :  { %741 = vmatpush3.bf16.msra.mxu0 %v810_v54 }
  0x38   :  { %742 = vmatprep.subr.bf16.mxu0 %v811_v55  ;;  %p828_p3 = por %p827_p2, %p826_p1 }
  0x3a   :  { %p829_p4 = pnand %p828_p3, %p822_p0 }
  0x3b   :  { %743 = vmatpush3.bf16.msra.mxu0 %v812_v56 }
  0x3c   :  { %744 = vmatprep.subr.bf16.mxu0 %v813_v57 }
  0x3f   :  { %745 = vmatpush3.bf16.msra.mxu0 %v814_v58 }
  0x42   :  { %560 = vmatmul.mubr.bf16.vlgmr.msra.gmra.mxu0 %v633_v59 }
  0xe2   :  { %v702_v60 = vpop.f32.mrf.mxu0 }
  0xe4   :  { %v703_v61 = vpop.f32.mrf.mxu0  ;;  %v724_v62 = vpop.f32.mrf.mxu1 }
  0xe5   :  { %v704_v8 = vadd.f32 %v703_v61, %v702_v60 }
  0xe6   :  { %v705_v63 = vpop.f32.mrf.mxu0  ;;  %v725_v0 = vpop.f32.mrf.mxu1 }
  0xe7   :  { %v482_v10 = vadd.f32 %v704_v8, %v628_v9  ;;  %v726_v11 = vadd.f32 %v725_v0, %v724_v62 }
  0xe8   :  { %v706_v1 = vpop.f32.mrf.mxu0  ;;  %v727_v2 = vpop.f32.mrf.mxu1 }
  0xe9   :  { %v522_v14 = vadd.f32 %v726_v11, %v482_v10 }
  0xea   :  { %v728_v3 = vpop.f32.mrf.mxu1 }
  0xf4   :  { %v601_v4 = vpop.f32.mrf.mxu1 }
  0xf6   :  { %v758_v5 = vpop.f32.mrf.mxu1 }
  0xf8   :  { %v604_v6 = vpop.f32.mrf.mxu1 }
  0xfa   :  { %v759_v7 = vpop.f32.mrf.mxu1 }
 0x102   :  { %v746_v12 = vpop.f32.mrf.mxu0 }
 0x104   :  { %v747_v13 = vpop.f32.mrf.mxu0 }
 0x105   :  { %v748_v15 = vadd.f32 %v747_v13, %v746_v12 }
 0x106   :  { %v749_v16 = vpop.f32.mrf.mxu0 }
 0x107   :  { %v562_v17 = vadd.f32 %v748_v15, %v522_v14 }
 0x108   :  { %v750_v18 = vpop.f32.mrf.mxu0 }
 0x109   :  { %v602_v19 = vadd.f32 %v601_v4, %v562_v17 }
 0x10b   :  { %v608_v20 = vmul.f32 0.70710677, %v602_v19  ;;  %v607_v22 = vmul.f32 0.5, %v602_v19 }
 0x10d   :  { %819 = verf.f32 %v608_v20 }
 0x11a   :  { %v820_v21 = vpop.eup %819 }
 0x11b   :  { %v610_v23 = vadd.f32 1.0, %v820_v21 }
 0x11d   :  { %v611_v24 = vmul.f32 %v610_v23, %v607_v22 }
 0x11f   :  { %613 = vst.msk [vmem:[#allocation2] sm:$0xff] %vm612_vm2, %v611_v24 }
 0x120   :  { %832 = shalt.err (!%p829_p4)
}
 0x121   :  { %623 = dma.vmem_to_hbm [thread:$0]  %s621_s11, 128, %s1034_s3, [#allocation3]  }
 0x122   :  { %841 = dma.done.wait [#allocation3], 128  }
 0x123   :  { %842 = vsyncadd [#allocation3], 4294967168 }
 0x124   :  { %627 = vsyncpa [#allocation3], 1 }

</bundles_post_ra>
